<compile_context>
chip_gen: v6e
topology: v6e:2x2x1
jax: 0.10.0
libtpu: 0.0.40
codegen_flags: <defaults>
</compile_context>

<pallas_src>
import jax
import jax.numpy as jnp
from jax.experimental import pallas as pl
from jax.experimental.pallas import tpu as pltpu

IN_FEATURES = 10
OUT_FEATURES = 1


def _linear_kernel(xt_ref, w_ref, b_ref, o_ref):
    # xt_ref: (IN_FEATURES, TILE_B) f32 VMEM   -- batch on the lane axis
    # w_ref : (IN_FEATURES,)        f32 SMEM   -- scalar path
    # b_ref : (OUT_FEATURES,)       f32 SMEM
    # o_ref : (1, TILE_B)           f32 VMEM   -- lane-dense output
    tile_b = o_ref.shape[-1]
    # Start the accumulator at the bias (scalar broadcast from SMEM).
    acc = jnp.full((1, tile_b), b_ref[0], dtype=jnp.float32)
    # IN_FEATURES == 10: fully unrolled VPU multiply-add chain; no MXU
    # push/pop round-trip and no zero-padded weight tile.
    for i in range(IN_FEATURES):
        acc = acc + xt_ref[i : i + 1, :] * w_ref[i]
    o_ref[...] = acc.astype(o_ref.dtype)


def linear_pallas(x, w, b):
    """y = x @ w.T + b for PyTorch-layout w of shape (1, 10), b of shape (1,)."""
    batch = x.shape[0]

    # Batch sits on the lane (last) axis; pad it up to a lane-dense tile.
    tile_b = 128 if batch <= 128 else 512
    b_pad = pl.cdiv(batch, tile_b) * tile_b

    xt = jnp.zeros((IN_FEATURES, b_pad), x.dtype).at[:, :batch].set(x.T)
    w_flat = w.reshape(IN_FEATURES).astype(jnp.float32)    # (10,)
    b_flat = b.reshape(OUT_FEATURES).astype(jnp.float32)   # (1,)

    out_t = pl.pallas_call(
        _linear_kernel,
        out_shape=jax.ShapeDtypeStruct((1, b_pad), x.dtype),
        grid=(b_pad // tile_b,),
        in_specs=[
            # x tile: full feature dim (10 == array dim), lane-dense batch tile.
            pl.BlockSpec((IN_FEATURES, tile_b), lambda i: (0, i)),
            # weights and bias live in SMEM, resident across all grid steps.
            pl.BlockSpec(memory_space=pltpu.MemorySpace.SMEM),
            pl.BlockSpec(memory_space=pltpu.MemorySpace.SMEM),
        ],
        out_specs=pl.BlockSpec((1, tile_b), lambda i: (0, i)),
        compiler_params=pltpu.CompilerParams(
            dimension_semantics=("parallel",),
        ),
    )(xt, w_flat, b_flat)

    # (1, b_pad) -> (batch, 1), dropping the lane padding.
    return out_t[0, :batch][:, None]


def init_params(key):
    # Mimic PyTorch nn.Linear default init: U(-1/sqrt(fan_in), 1/sqrt(fan_in)).
    kw, kb = jax.random.split(key)
    bound = 1.0 / jnp.sqrt(jnp.float32(IN_FEATURES))
    # PyTorch stores weight as (out_features, in_features).
    w = jax.random.uniform(kw, (OUT_FEATURES, IN_FEATURES), jnp.float32, -bound, bound)
    b = jax.random.uniform(kb, (OUT_FEATURES,), jnp.float32, -bound, bound)
    return w, b


if __name__ == "__main__":
    key = jax.random.PRNGKey(0)
    k_x, k_p = jax.random.split(key)

    batch = 8
    x = jax.random.normal(k_x, (batch, IN_FEATURES), jnp.float32)
    w, b = init_params(k_p)

    y = linear_pallas(x, w, b)
    jax.block_until_ready(y)

    # Reference check against plain JAX (same math as PyTorch: x @ W.T + b).
    y_ref = x @ w.T + b[None, :]
    assert y.shape == (batch, OUT_FEATURES)
    assert jnp.allclose(y, y_ref, atol=1e-5), "mismatch vs reference"

    print("KERNEL_OK")
</pallas_src>

<mosaic_0001>
module attributes {stable_mosaic.version = 11 : i64} {
  func.func @_linear_kernel(%arg0: i32, %arg1: memref<10x128xf32, #tpu.memory_space<vmem>>, %arg2: memref<10xf32, #tpu.memory_space<smem>>, %arg3: memref<1xf32, #tpu.memory_space<smem>>, %arg4: memref<1x128xf32, #tpu.memory_space<vmem>>) attributes {dimension_semantics = [#tpu.dimension_semantics<parallel>], iteration_bounds = array<i64: 1>, scalar_prefetch = 0 : i64, scratch_operands = 0 : i64, tpu.core_type = #tpu.core_type<tc>, window_params = [{transform_indices = @transform_0, window_bounds = array<i64: 10, 128>}, {transform_indices = @transform_1, window_bounds = array<i64: 10>}, {transform_indices = @transform_2, window_bounds = array<i64: 1>}, {transform_indices = @transform_3, window_bounds = array<i64: 1, 128>}]} {
    %c0 = arith.constant 0 : index
    %0 = memref.load %arg3[%c0] : memref<1xf32, #tpu.memory_space<smem>>
    %1 = vector.broadcast %0 : f32 to vector<1x128xf32>
    %c0_0 = arith.constant 0 : index
    %c0_1 = arith.constant 0 : index
    %2 = vector.load %arg1[%c0_0, %c0_1] : memref<10x128xf32, #tpu.memory_space<vmem>>, vector<1x128xf32>
    %c0_2 = arith.constant 0 : index
    %3 = memref.load %arg2[%c0_2] : memref<10xf32, #tpu.memory_space<smem>>
    %4 = vector.broadcast %3 : f32 to vector<1x128xf32>
    %5 = arith.mulf %2, %4 : vector<1x128xf32>
    %6 = arith.addf %1, %5 : vector<1x128xf32>
    %c1 = arith.constant 1 : index
    %c0_3 = arith.constant 0 : index
    %7 = vector.load %arg1[%c1, %c0_3] : memref<10x128xf32, #tpu.memory_space<vmem>>, vector<1x128xf32>
    %c1_4 = arith.constant 1 : index
    %8 = memref.load %arg2[%c1_4] : memref<10xf32, #tpu.memory_space<smem>>
    %9 = vector.broadcast %8 : f32 to vector<1x128xf32>
    %10 = arith.mulf %7, %9 : vector<1x128xf32>
    %11 = arith.addf %6, %10 : vector<1x128xf32>
    %c2 = arith.constant 2 : index
    %c0_5 = arith.constant 0 : index
    %12 = vector.load %arg1[%c2, %c0_5] : memref<10x128xf32, #tpu.memory_space<vmem>>, vector<1x128xf32>
    %c2_6 = arith.constant 2 : index
    %13 = memref.load %arg2[%c2_6] : memref<10xf32, #tpu.memory_space<smem>>
    %14 = vector.broadcast %13 : f32 to vector<1x128xf32>
    %15 = arith.mulf %12, %14 : vector<1x128xf32>
    %16 = arith.addf %11, %15 : vector<1x128xf32>
    %c3 = arith.constant 3 : index
    %c0_7 = arith.constant 0 : index
    %17 = vector.load %arg1[%c3, %c0_7] : memref<10x128xf32, #tpu.memory_space<vmem>>, vector<1x128xf32>
    %c3_8 = arith.constant 3 : index
    %18 = memref.load %arg2[%c3_8] : memref<10xf32, #tpu.memory_space<smem>>
    %19 = vector.broadcast %18 : f32 to vector<1x128xf32>
    %20 = arith.mulf %17, %19 : vector<1x128xf32>
    %21 = arith.addf %16, %20 : vector<1x128xf32>
    %c4 = arith.constant 4 : index
    %c0_9 = arith.constant 0 : index
    %22 = vector.load %arg1[%c4, %c0_9] : memref<10x128xf32, #tpu.memory_space<vmem>>, vector<1x128xf32>
    %c4_10 = arith.constant 4 : index
    %23 = memref.load %arg2[%c4_10] : memref<10xf32, #tpu.memory_space<smem>>
    %24 = vector.broadcast %23 : f32 to vector<1x128xf32>
    %25 = arith.mulf %22, %24 : vector<1x128xf32>
    %26 = arith.addf %21, %25 : vector<1x128xf32>
    %c5 = arith.constant 5 : index
    %c0_11 = arith.constant 0 : index
    %27 = vector.load %arg1[%c5, %c0_11] : memref<10x128xf32, #tpu.memory_space<vmem>>, vector<1x128xf32>
    %c5_12 = arith.constant 5 : index
    %28 = memref.load %arg2[%c5_12] : memref<10xf32, #tpu.memory_space<smem>>
    %29 = vector.broadcast %28 : f32 to vector<1x128xf32>
    %30 = arith.mulf %27, %29 : vector<1x128xf32>
    %31 = arith.addf %26, %30 : vector<1x128xf32>
    %c6 = arith.constant 6 : index
    %c0_13 = arith.constant 0 : index
    %32 = vector.load %arg1[%c6, %c0_13] : memref<10x128xf32, #tpu.memory_space<vmem>>, vector<1x128xf32>
    %c6_14 = arith.constant 6 : index
    %33 = memref.load %arg2[%c6_14] : memref<10xf32, #tpu.memory_space<smem>>
    %34 = vector.broadcast %33 : f32 to vector<1x128xf32>
    %35 = arith.mulf %32, %34 : vector<1x128xf32>
    %36 = arith.addf %31, %35 : vector<1x128xf32>
    %c7 = arith.constant 7 : index
    %c0_15 = arith.constant 0 : index
    %37 = vector.load %arg1[%c7, %c0_15] : memref<10x128xf32, #tpu.memory_space<vmem>>, vector<1x128xf32>
    %c7_16 = arith.constant 7 : index
    %38 = memref.load %arg2[%c7_16] : memref<10xf32, #tpu.memory_space<smem>>
    %39 = vector.broadcast %38 : f32 to vector<1x128xf32>
    %40 = arith.mulf %37, %39 : vector<1x128xf32>
    %41 = arith.addf %36, %40 : vector<1x128xf32>
    %c8 = arith.constant 8 : index
    %c0_17 = arith.constant 0 : index
    %42 = vector.load %arg1[%c8, %c0_17] : memref<10x128xf32, #tpu.memory_space<vmem>>, vector<1x128xf32>
    %c8_18 = arith.constant 8 : index
    %43 = memref.load %arg2[%c8_18] : memref<10xf32, #tpu.memory_space<smem>>
    %44 = vector.broadcast %43 : f32 to vector<1x128xf32>
    %45 = arith.mulf %42, %44 : vector<1x128xf32>
    %46 = arith.addf %41, %45 : vector<1x128xf32>
    %c9 = arith.constant 9 : index
    %c0_19 = arith.constant 0 : index
    %47 = vector.load %arg1[%c9, %c0_19] : memref<10x128xf32, #tpu.memory_space<vmem>>, vector<1x128xf32>
    %c9_20 = arith.constant 9 : index
    %48 = memref.load %arg2[%c9_20] : memref<10xf32, #tpu.memory_space<smem>>
    %49 = vector.broadcast %48 : f32 to vector<1x128xf32>
    %50 = arith.mulf %47, %49 : vector<1x128xf32>
    %51 = arith.addf %46, %50 : vector<1x128xf32>
    %c0_21 = arith.constant 0 : index
    %c0_22 = arith.constant 0 : index
    %52 = vector.load %arg4[%c0_21, %c0_22] : memref<1x128xf32, #tpu.memory_space<vmem>>, vector<1x128xf32>
    tpu.vector_store %arg4[%c0_21, %c0_22], %51 {strides = array<i32>} : memref<1x128xf32, #tpu.memory_space<vmem>>, vector<1x128xf32>,
    return
  }
  func.func @transform_0(%arg0: i32) -> (i32, i32) {
    %c0_i32 = arith.constant 0 : i32
    %c0_i32_0 = arith.constant 0 : i32
    return %c0_i32, %arg0 : i32, i32
  }
  func.func @transform_1(%arg0: i32) -> i32 {
    %c0_i32 = arith.constant 0 : i32
    %c0_i32_0 = arith.constant 0 : i32
    return %c0_i32 : i32
  }
  func.func @transform_2(%arg0: i32) -> i32 {
    %c0_i32 = arith.constant 0 : i32
    %c0_i32_0 = arith.constant 0 : i32
    return %c0_i32 : i32
  }
  func.func @transform_3(%arg0: i32) -> (i32, i32) {
    %c0_i32 = arith.constant 0 : i32
    %c0_i32_0 = arith.constant 0 : i32
    return %c0_i32, %arg0 : i32, i32
  }
}

</mosaic_0001>

<bundles_post_ra>
// kernel: tpu_custom_call.1
= control target key start
LH: loop header
LB: loop body
LE: loop exit
PB: predicated region body
PF: predicated region fallthrough
CT: control target
= control target key end

     0   :  { %9 = vsyncpa [#allocation4], 0  ;;  %s221_s0 = inlined_call_operand.hbm [shape: f32[10,128], index: 0, kind: input, shape index: {}]   ;;  %s222_s1 = inlined_call_operand.vmem [shape: f32[10], index: 1, kind: input, shape index: {}]   ;;  %s223_s2 = inlined_call_operand.<no memory space> [shape: f32[1], index: 2, kind: input, shape index: {}]   ;;  %s224_s3 = inlined_call_operand.hbm [shape: f32[1,128], index: 3, kind: output, shape index: {}]  }
   0x1   :  { %10 = vsyncpa [#allocation6], 0 }
   0x2   :  { %11 = vsyncpa [#allocation5], 0  ;;  %s184_s12 = smov [#allocation3]   ;;  %s30_s16 = sshll.u32 %s222_s1, 4  ;;  %s31_s16 = int_to_ptr.vmem [resolvable:$true] %s30_s16 }
   0x3   :  { %s17_s13 = sshll.u32 %s184_s12, 4  ;;  %s18_s13 = int_to_ptr.vmem [resolvable:$true] %s17_s13 }
   0x4   :  { %s134_s17 = scalar_lea.vmem %s18_s13, 256  ;;  %p139_p1 = scmp.lt.s32.totalorder %s18_s13, %s18_s13 }
   0x5   :  { %p135_p0 = scmp.ne.s32.totalorder %s18_s13, %s134_s17  ;;  %p140_p2 = scmp.lt.s32.totalorder %s134_s17, %s134_s17 }
   0x7   :  { %p141_p3 = por %p140_p2, %p139_p1 }
   0x9   :  { %p142_p4 = pnand %p141_p3, %p135_p0 }
   0xb   :  { %145 = shalt.err (!%p142_p4)
}
   0xc   :  { %s185_s18 = smov 128   ;;  %s186_s19 = smov 8  }
   0xd   :  { %23 = dma.hbm_to_vmem [thread:$0]  %s221_s0, 256, %s18_s13, [#allocation4], %s185_s18, %s185_s18, %s186_s19  }
   0xe   :  { %s146_s22 = scalar_lea.vmem %s31_s16, 16  ;;  %p151_p6 = scmp.lt.s32.totalorder %s31_s16, %s31_s16 }
   0xf   :  { %p147_p5 = scmp.ne.s32.totalorder %s31_s16, %s146_s22  ;;  %p152_p7 = scmp.lt.s32.totalorder %s146_s22, %s146_s22 }
  0x11   :  { %p153_p8 = por %p152_p7, %p151_p6 }
  0x13   :  { %p154_p9 = pnand %p153_p8, %p147_p5 }
  0x15   :  { %157 = shalt.err (!%p154_p9)
}
  0x16   :  { %s187_s1 = smov [#allocation7]  }
  0x17   :  { %33 = dma.vmem_to_smem %s31_s16, 16, %s187_s1, [#allocation6]  }
  0x18   :  { %178 = dma.done.wait [#allocation4], 256  }
  0x19   :  { %179 = vsyncadd [#allocation4], 4294967040 }
  0x1a   :  { %180 = dma.done.wait [#allocation6], 16  }
  0x1b   :  { %181 = vsyncadd [#allocation6], 4294967280 }
  0x1c   :  { %42 = sfence }
  0x1d   :  { %s46_s23 = sld [smem:[#allocation7]]  ;;  %v45_v0 = vld [vmem:[#allocation3] sm:$0x1]  ;;  %v50_v1 = vld [vmem:[#allocation3 + $0x1] sm:$0x1]  ;;  %v44_v2 = vstv %s223_s2  ;;  %s188_s6 = smov [#allocation8]  }
  0x1e   :  { %s112_s24 = sld [smem:[#allocation7 + $0x1]]  ;;  %v55_v4 = vld [vmem:[#allocation3 + $0x2] sm:$0x1]  ;;  %v60_v9 = vld [vmem:[#allocation3 + $0x3] sm:$0x1]  ;;  %s102_s7 = sshll.u32 %s188_s6, 4  ;;  %s103_s7 = int_to_ptr.vmem [resolvable:$true] %s102_s7 }
  0x1f   :  { %s113_s25 = sld [smem:[#allocation7 + $0x2]]  ;;  %v65_v13 = vld [vmem:[#allocation3 + $0x4] sm:$0x1]  ;;  %v70_v17 = vld [vmem:[#allocation3 + $0x5] sm:$0x1]  ;;  %s158_s8 = scalar_lea.vmem %s103_s7, 16 }
  0x20   :  { %s114_s26 = sld [smem:[#allocation7 + $0x3]]  ;;  %v75_v21 = vld [vmem:[#allocation3 + $0x6] sm:$0x1]  ;;  %v80_v25 = vld [vmem:[#allocation3 + $0x7] sm:$0x1]  ;;  %p159_p10 = scmp.ne.s32.totalorder %s103_s7, %s158_s8 }
  0x21   :  { %s115_s0 = sld [smem:[#allocation7 + $0x4]]  ;;  %v85_v29 = vld [vmem:[#allocation3 + $0x8] sm:$0x1]  ;;  %v90_v33 = vld [vmem:[#allocation3 + $0x9] sm:$0x1]  ;;  %s162_s9 = scalar_lea.vmem %s103_s7, 32 }
  0x22   :  { %s116_s27 = sld [smem:[#allocation7 + $0x5]]  ;;  %p163_p11 = scmp.lt.s32.totalorder %s103_s7, %s103_s7 }
  0x23   :  { %v47_v3 = vstv %s46_s23  ;;  %s117_s30 = sld [smem:[#allocation7 + $0x6]]  ;;  %p164_p12 = scmp.lt.s32.totalorder %s162_s9, %s158_s8 }
  0x24   :  { %v48_v5 = vmul.f32 %v47_v3, %v45_v0  ;;  %v52_v6 = vstv %s112_s24  ;;  %s118_s4 = sld [smem:[#allocation7 + $0x7]] }
  0x25   :  { %v53_v7 = vmul.f32 %v52_v6, %v50_v1  ;;  %v57_v8 = vstv %s113_s25  ;;  %s119_s5 = sld [smem:[#allocation7 + $0x8]]  ;;  %p165_p13 = por %p164_p12, %p163_p11 }
  0x26   :  { %v49_v10 = vadd.f32 %v48_v5, %v44_v2  ;;  %v58_v11 = vmul.f32 %v57_v8, %v55_v4  ;;  %v62_v12 = vstv %s114_s26  ;;  %s120_s2 = sld [smem:[#allocation7 + $0x9]] }
  0x27   :  { %v67_v14 = vstv %s115_s0  ;;  %v63_v16 = vmul.f32 %v62_v12, %v60_v9  ;;  %p166_p0 = pnand %p165_p13, %p159_p10 }
  0x28   :  { %v54_v15 = vadd.f32 %v53_v7, %v49_v10  ;;  %v72_v18 = vstv %s116_s27  ;;  %v68_v20 = vmul.f32 %v67_v14, %v65_v13 }
  0x29   :  { %v77_v22 = vstv %s117_s30  ;;  %v73_v24 = vmul.f32 %v72_v18, %v70_v17 }
  0x2a   :  { %v59_v19 = vadd.f32 %v58_v11, %v54_v15  ;;  %v82_v26 = vstv %s118_s4  ;;  %v78_v28 = vmul.f32 %v77_v22, %v75_v21 }
  0x2b   :  { %v87_v30 = vstv %s119_s5  ;;  %v83_v32 = vmul.f32 %v82_v26, %v80_v25 }
  0x2c   :  { %v64_v23 = vadd.f32 %v63_v16, %v59_v19  ;;  %v92_v34 = vstv %s120_s2  ;;  %v88_v36 = vmul.f32 %v87_v30, %v85_v29 }
  0x2d   :  { %v93_v38 = vmul.f32 %v92_v34, %v90_v33 }
  0x2e   :  { %v69_v27 = vadd.f32 %v68_v20, %v64_v23 }
  0x30   :  { %v74_v31 = vadd.f32 %v73_v24, %v69_v27 }
  0x32   :  { %v79_v35 = vadd.f32 %v78_v28, %v74_v31 }
  0x34   :  { %v84_v37 = vadd.f32 %v83_v32, %v79_v35 }
  0x36   :  { %v89_v39 = vadd.f32 %v88_v36, %v84_v37 }
  0x38   :  { %v94_v40 = vadd.f32 %v93_v38, %v89_v39 }
  0x3a   :  { %95 = vst [vmem:[#allocation8] sm:$0x1] %v94_v40 }
  0x3b   :  { %169 = shalt.err (!%p166_p0)
}
  0x3c   :  { %105 = dma.vmem_to_hbm [thread:$0]  %s103_s7, 16, %s224_s3, [#allocation5]  }
  0x3d   :  { %182 = dma.done.wait [#allocation5], 16  }
  0x3e   :  { %183 = vsyncadd [#allocation5], 4294967280 }
  0x3f   :  { %109 = vsyncpa [#allocation4], 1 }
  0x40   :  { %110 = vsyncpa [#allocation5], 1 }
  0x41   :  { %111 = vsyncpa [#allocation6], 1 }

</bundles_post_ra>
